<compile_context>
chip_gen: v5e
topology: v5e:2x2
jax: 0.10.0
libtpu: 0.0.40
codegen_flags: <defaults>
</compile_context>

<pallas_src>
import jax
import jax.numpy as jnp
from jax.experimental import pallas as pl
from jax.experimental.pallas import tpu as pltpu


def actor_kernel(x_ref,
                 w1_ref, b1_ref,
                 w2_ref, b2_ref,
                 w3_ref, b3_ref,
                 w4_ref, b4_ref,
                 out_ref):
    """Fused fc1->relu->fc2->relu->fc3->relu->fc4->softmax for one batch tile."""
    x = x_ref[...]

    def dense(h, w_ref, b_ref):
        # Cast activations to the weight dtype (bf16 weights hit the fast MXU
        # path on v6e/v7x; no-op for f32 weights). Accumulate in f32.
        y = jnp.dot(h.astype(w_ref.dtype), w_ref[...],
                    preferred_element_type=jnp.float32)
        return y + b_ref[...]            # bias add / everything below in f32

    h = jnp.maximum(dense(x, w1_ref, b1_ref), 0.0)
    h = jnp.maximum(dense(h, w2_ref, b2_ref), 0.0)
    h = jnp.maximum(dense(h, w3_ref, b3_ref), 0.0)
    logits = dense(h, w4_ref, b4_ref)    # padded lanes carry -1e30 bias

    # Softmax over the (lane-padded) last dim: exactly 2 cross-lane reductions
    # (max, sum), one EUP exp, one EUP reciprocal. Padded lanes -> exp(..)==0.
    m = jnp.max(logits, axis=-1, keepdims=True)
    e = jnp.exp(logits - m)
    denom = jnp.sum(e, axis=-1, keepdims=True)
    out_ref[...] = e * pl.reciprocal(denom, approx=True)


def actor_forward(state, params, *, block_b=128):
    """Actor forward pass; returns action probabilities [B, output_size].

    torch.distributions.Categorical has no array equivalent; its defining
    parameter (the per-row probability vector) is returned instead.
    """
    (w1, b1), (w2, b2), (w3, b3), (w4, b4) = params
    B, in_size = state.shape
    out_size = w4.shape[1]

    # ---- lane-dense final layer: pad output features to a multiple of 128 ----
    out_pad = max(128, 128 * pl.cdiv(out_size, 128))
    if out_pad != out_size:
        w4p = jnp.zeros((w4.shape[0], out_pad), w4.dtype).at[:, :out_size].set(w4)
        b4p = jnp.full((1, out_pad), -1e30, jnp.float32).at[:, :out_size].set(b4)
    else:
        w4p, b4p = w4, b4

    # ---- batch tiling: TB multiple of 8 sublanes, pad B up to a multiple ----
    TB = min(block_b, 8 * pl.cdiv(B, 8))
    Bp = TB * pl.cdiv(B, TB)
    if Bp != B:
        state_p = jnp.zeros((Bp, in_size), state.dtype).at[:B].set(state)
    else:
        state_p = state

    def resident(arr):
        # Same block for every grid step -> loaded once, stays in VMEM.
        return pl.BlockSpec(arr.shape, lambda i: (0, 0))

    probs_padded = pl.pallas_call(
        actor_kernel,
        out_shape=jax.ShapeDtypeStruct((Bp, out_pad), jnp.float32),
        grid_spec=pl.GridSpec(
            grid=(Bp // TB,),
            in_specs=[
                pl.BlockSpec((TB, in_size), lambda i: (i, 0)),
                resident(w1), resident(b1),
                resident(w2), resident(b2),
                resident(w3), resident(b3),
                resident(w4p), resident(b4p),
            ],
            out_specs=pl.BlockSpec((TB, out_pad), lambda i: (i, 0)),
        ),
        compiler_params=pltpu.CompilerParams(
            # Batch axis is embarrassingly parallel -> shards across the two
            # TensorCores on v7x; harmless on v5e/v6e.
            dimension_semantics=("parallel",),
        ),
    )(state_p, w1, b1, w2, b2, w3, b3, w4p, b4p)

    return probs_padded[:B, :out_size]


def init_actor_params(key, input_size, hidden_size, output_size,
                      weight_dtype=jnp.float32):
    """Deterministic parameter init matching nn.Linear shapes.

    PyTorch nn.Linear stores W as [out, in]; we store the transpose [in, out].
    Set weight_dtype=jnp.bfloat16 for large hidden sizes (halves VMEM/HBM
    traffic and hits the bf16 MXU peak on v6e/v7x); biases stay f32.
    """
    dims = [(input_size, hidden_size),
            (hidden_size, hidden_size),
            (hidden_size, hidden_size),
            (hidden_size, output_size)]
    params = []
    for i, (fan_in, fan_out) in enumerate(dims):
        kw, kb, key = jax.random.split(jax.random.fold_in(key, i), 3)
        bound = 1.0 / (fan_in ** 0.5)
        w = jax.random.uniform(kw, (fan_in, fan_out), jnp.float32, -bound, bound)
        b = jax.random.uniform(kb, (1, fan_out), jnp.float32, -bound, bound)
        params.append((w.astype(weight_dtype), b))
    return params


if __name__ == "__main__":
    # TODO(synk): torch.distributions.Categorical is a Python object; we return
    # its probs tensor (the softmax output), which fully parameterizes it.
    batch = 256          # many rollout states per call (amortizes launch cost)
    input_size = 16
    hidden_size = 32
    output_size = 8

    key = jax.random.PRNGKey(0)
    k_state, k_params = jax.random.split(key)

    state = jax.random.normal(k_state, (batch, input_size), dtype=jnp.float32)
    params = init_actor_params(k_params, input_size, hidden_size, output_size)

    probs = actor_forward(state, params)
    probs = jax.block_until_ready(probs)

    # pure-JAX reference for correctness
    def ref_forward(x, ps):
        (w1, b1), (w2, b2), (w3, b3), (w4, b4) = ps
        h = jax.nn.relu(x @ w1.astype(jnp.float32) + b1)
        h = jax.nn.relu(h @ w2.astype(jnp.float32) + b2)
        h = jax.nn.relu(h @ w3.astype(jnp.float32) + b3)
        return jax.nn.softmax(h @ w4.astype(jnp.float32) + b4, axis=-1)

    ref = ref_forward(state, params)

    assert probs.shape == (batch, output_size)
    assert bool(jnp.all(probs >= 0.0))
    # approx reciprocal -> row sums within ~1e-3 of 1
    assert bool(jnp.allclose(jnp.sum(probs, axis=-1), 1.0, atol=5e-3))
    assert bool(jnp.allclose(probs, ref, atol=2e-3, rtol=2e-3))

    print("KERNEL_OK")
</pallas_src>

<mosaic_0001>
module attributes {stable_mosaic.version = 11 : i64} {
  func.func @actor_kernel(%arg0: i32, %arg1: memref<128x16xf32, #tpu.memory_space<vmem>>, %arg2: memref<16x32xf32, #tpu.memory_space<vmem>>, %arg3: memref<1x32xf32, #tpu.memory_space<vmem>>, %arg4: memref<32x32xf32, #tpu.memory_space<vmem>>, %arg5: memref<1x32xf32, #tpu.memory_space<vmem>>, %arg6: memref<32x32xf32, #tpu.memory_space<vmem>>, %arg7: memref<1x32xf32, #tpu.memory_space<vmem>>, %arg8: memref<32x128xf32, #tpu.memory_space<vmem>>, %arg9: memref<1x128xf32, #tpu.memory_space<vmem>>, %arg10: memref<128x128xf32, #tpu.memory_space<vmem>>) attributes {dimension_semantics = [#tpu.dimension_semantics<parallel>], iteration_bounds = array<i64: 2>, scalar_prefetch = 0 : i64, scratch_operands = 0 : i64, tpu.core_type = #tpu.core_type<tc>, window_params = [{transform_indices = @transform_0, window_bounds = array<i64: 128, 16>}, {pipeline_mode = #tpu.pipeline_mode<synchronous>, transform_indices = @transform_1, window_bounds = array<i64: 16, 32>}, {pipeline_mode = #tpu.pipeline_mode<synchronous>, transform_indices = @transform_2, window_bounds = array<i64: 1, 32>}, {pipeline_mode = #tpu.pipeline_mode<synchronous>, transform_indices = @transform_3, window_bounds = array<i64: 32, 32>}, {pipeline_mode = #tpu.pipeline_mode<synchronous>, transform_indices = @transform_4, window_bounds = array<i64: 1, 32>}, {pipeline_mode = #tpu.pipeline_mode<synchronous>, transform_indices = @transform_5, window_bounds = array<i64: 32, 32>}, {pipeline_mode = #tpu.pipeline_mode<synchronous>, transform_indices = @transform_6, window_bounds = array<i64: 1, 32>}, {pipeline_mode = #tpu.pipeline_mode<synchronous>, transform_indices = @transform_7, window_bounds = array<i64: 32, 128>}, {pipeline_mode = #tpu.pipeline_mode<synchronous>, transform_indices = @transform_8, window_bounds = array<i64: 1, 128>}, {transform_indices = @transform_9, window_bounds = array<i64: 128, 128>}]} {
    %c0 = arith.constant 0 : index
    %c0_0 = arith.constant 0 : index
    %0 = vector.load %arg1[%c0, %c0_0] : memref<128x16xf32, #tpu.memory_space<vmem>>, vector<128x16xf32>
    %c0_1 = arith.constant 0 : index
    %c0_2 = arith.constant 0 : index
    %1 = vector.load %arg2[%c0_1, %c0_2] : memref<16x32xf32, #tpu.memory_space<vmem>>, vector<16x32xf32>
    %cst = arith.constant dense<0.000000e+00> : vector<128x32xf32>
    %2 = tpu.matmul %0, %1, %cst {dimension_numbers = #tpu.dot_dimension_numbers<[1], [0], [0], [1], [0, 0, 1, 1], [], []>} : vector<128x16xf32>, vector<16x32xf32>, vector<128x32xf32> -> vector<128x32xf32>
    %c0_3 = arith.constant 0 : index
    %c0_4 = arith.constant 0 : index
    %3 = vector.load %arg3[%c0_3, %c0_4] : memref<1x32xf32, #tpu.memory_space<vmem>>, vector<1x32xf32>
    %4 = vector.broadcast %3 : vector<1x32xf32> to vector<128x32xf32>
    %5 = arith.addf %2, %4 : vector<128x32xf32>
    %cst_5 = arith.constant 0.000000e+00 : f32
    %6 = vector.broadcast %cst_5 : f32 to vector<128x32xf32>
    %7 = arith.maximumf %5, %6 : vector<128x32xf32>
    %c0_6 = arith.constant 0 : index
    %c0_7 = arith.constant 0 : index
    %8 = vector.load %arg4[%c0_6, %c0_7] : memref<32x32xf32, #tpu.memory_space<vmem>>, vector<32x32xf32>
    %cst_8 = arith.constant dense<0.000000e+00> : vector<128x32xf32>
    %9 = tpu.matmul %7, %8, %cst_8 {dimension_numbers = #tpu.dot_dimension_numbers<[1], [0], [0], [1], [0, 0, 1, 1], [], []>} : vector<128x32xf32>, vector<32x32xf32>, vector<128x32xf32> -> vector<128x32xf32>
    %c0_9 = arith.constant 0 : index
    %c0_10 = arith.constant 0 : index
    %10 = vector.load %arg5[%c0_9, %c0_10] : memref<1x32xf32, #tpu.memory_space<vmem>>, vector<1x32xf32>
    %11 = vector.broadcast %10 : vector<1x32xf32> to vector<128x32xf32>
    %12 = arith.addf %9, %11 : vector<128x32xf32>
    %cst_11 = arith.constant 0.000000e+00 : f32
    %13 = vector.broadcast %cst_11 : f32 to vector<128x32xf32>
    %14 = arith.maximumf %12, %13 : vector<128x32xf32>
    %c0_12 = arith.constant 0 : index
    %c0_13 = arith.constant 0 : index
    %15 = vector.load %arg6[%c0_12, %c0_13] : memref<32x32xf32, #tpu.memory_space<vmem>>, vector<32x32xf32>
    %cst_14 = arith.constant dense<0.000000e+00> : vector<128x32xf32>
    %16 = tpu.matmul %14, %15, %cst_14 {dimension_numbers = #tpu.dot_dimension_numbers<[1], [0], [0], [1], [0, 0, 1, 1], [], []>} : vector<128x32xf32>, vector<32x32xf32>, vector<128x32xf32> -> vector<128x32xf32>
    %c0_15 = arith.constant 0 : index
    %c0_16 = arith.constant 0 : index
    %17 = vector.load %arg7[%c0_15, %c0_16] : memref<1x32xf32, #tpu.memory_space<vmem>>, vector<1x32xf32>
    %18 = vector.broadcast %17 : vector<1x32xf32> to vector<128x32xf32>
    %19 = arith.addf %16, %18 : vector<128x32xf32>
    %cst_17 = arith.constant 0.000000e+00 : f32
    %20 = vector.broadcast %cst_17 : f32 to vector<128x32xf32>
    %21 = arith.maximumf %19, %20 : vector<128x32xf32>
    %c0_18 = arith.constant 0 : index
    %c0_19 = arith.constant 0 : index
    %22 = vector.load %arg8[%c0_18, %c0_19] : memref<32x128xf32, #tpu.memory_space<vmem>>, vector<32x128xf32>
    %cst_20 = arith.constant dense<0.000000e+00> : vector<128x128xf32>
    %23 = tpu.matmul %21, %22, %cst_20 {dimension_numbers = #tpu.dot_dimension_numbers<[1], [0], [0], [1], [0, 0, 1, 1], [], []>} : vector<128x32xf32>, vector<32x128xf32>, vector<128x128xf32> -> vector<128x128xf32>
    %c0_21 = arith.constant 0 : index
    %c0_22 = arith.constant 0 : index
    %24 = vector.load %arg9[%c0_21, %c0_22] : memref<1x128xf32, #tpu.memory_space<vmem>>, vector<1x128xf32>
    %25 = vector.broadcast %24 : vector<1x128xf32> to vector<128x128xf32>
    %26 = arith.addf %23, %25 : vector<128x128xf32>
    %cst_23 = arith.constant dense<0xFF800000> : vector<128xf32>
    %27 = vector.multi_reduction <maximumf>, %26, %cst_23 [1] : vector<128x128xf32> to vector<128xf32>
    %28 = vector.shape_cast %27 : vector<128xf32> to vector<128x1xf32>
    %29 = vector.broadcast %28 : vector<128x1xf32> to vector<128x128xf32>
    %30 = arith.subf %26, %29 : vector<128x128xf32>
    %31 = math.exp %30 : vector<128x128xf32>
    %cst_24 = arith.constant dense<0.000000e+00> : vector<128xf32>
    %32 = vector.multi_reduction <add>, %31, %cst_24 [1] : vector<128x128xf32> to vector<128xf32>
    %33 = vector.shape_cast %32 : vector<128xf32> to vector<128x1xf32>
    %34 = tpu.reciprocal %33 {approx = true} : vector<128x1xf32> -> vector<128x1xf32>
    %35 = vector.broadcast %34 : vector<128x1xf32> to vector<128x128xf32>
    %36 = arith.mulf %31, %35 : vector<128x128xf32>
    %c0_25 = arith.constant 0 : index
    %c0_26 = arith.constant 0 : index
    %37 = vector.load %arg10[%c0_25, %c0_26] : memref<128x128xf32, #tpu.memory_space<vmem>>, vector<128x128xf32>
    tpu.vector_store %arg10[%c0_25, %c0_26], %36 {strides = array<i32>} : memref<128x128xf32, #tpu.memory_space<vmem>>, vector<128x128xf32>,
    return
  }
  func.func @transform_0(%arg0: i32) -> (i32, i32) {
    %c0_i32 = arith.constant 0 : i32
    %c0_i32_0 = arith.constant 0 : i32
    return %arg0, %c0_i32 : i32, i32
  }
  func.func @transform_1(%arg0: i32) -> (i32, i32) {
    %c0_i32 = arith.constant 0 : i32
    %c0_i32_0 = arith.constant 0 : i32
    %c0_i32_1 = arith.constant 0 : i32
    return %c0_i32, %c0_i32_0 : i32, i32
  }
  func.func @transform_2(%arg0: i32) -> (i32, i32) {
    %c0_i32 = arith.constant 0 : i32
    %c0_i32_0 = arith.constant 0 : i32
    %c0_i32_1 = arith.constant 0 : i32
    return %c0_i32, %c0_i32_0 : i32, i32
  }
  func.func @transform_3(%arg0: i32) -> (i32, i32) {
    %c0_i32 = arith.constant 0 : i32
    %c0_i32_0 = arith.constant 0 : i32
    %c0_i32_1 = arith.constant 0 : i32
    return %c0_i32, %c0_i32_0 : i32, i32
  }
  func.func @transform_4(%arg0: i32) -> (i32, i32) {
    %c0_i32 = arith.constant 0 : i32
    %c0_i32_0 = arith.constant 0 : i32
    %c0_i32_1 = arith.constant 0 : i32
    return %c0_i32, %c0_i32_0 : i32, i32
  }
  func.func @transform_5(%arg0: i32) -> (i32, i32) {
    %c0_i32 = arith.constant 0 : i32
    %c0_i32_0 = arith.constant 0 : i32
    %c0_i32_1 = arith.constant 0 : i32
    return %c0_i32, %c0_i32_0 : i32, i32
  }
  func.func @transform_6(%arg0: i32) -> (i32, i32) {
    %c0_i32 = arith.constant 0 : i32
    %c0_i32_0 = arith.constant 0 : i32
    %c0_i32_1 = arith.constant 0 : i32
    return %c0_i32, %c0_i32_0 : i32, i32
  }
  func.func @transform_7(%arg0: i32) -> (i32, i32) {
    %c0_i32 = arith.constant 0 : i32
    %c0_i32_0 = arith.constant 0 : i32
    %c0_i32_1 = arith.constant 0 : i32
    return %c0_i32, %c0_i32_0 : i32, i32
  }
  func.func @transform_8(%arg0: i32) -> (i32, i32) {
    %c0_i32 = arith.constant 0 : i32
    %c0_i32_0 = arith.constant 0 : i32
    %c0_i32_1 = arith.constant 0 : i32
    return %c0_i32, %c0_i32_0 : i32, i32
  }
  func.func @transform_9(%arg0: i32) -> (i32, i32) {
    %c0_i32 = arith.constant 0 : i32
    %c0_i32_0 = arith.constant 0 : i32
    return %arg0, %c0_i32 : i32, i32
  }
}

</mosaic_0001>

<bundles_post_ra>
// kernel: tpu_custom_call.1
= control target key start
LH: loop header
LB: loop body
LE: loop exit
PB: predicated region body
PF: predicated region fallthrough
CT: control target
= control target key end

     0   :  { %14 = vsyncpa [#allocation3], 0  ;;  %s1809_s0 = inlined_call_operand.vmem [shape: f32[256,16], index: 0, kind: input, shape index: {}]   ;;  %s1810_s1 = inlined_call_operand.vmem [shape: f32[16,32], index: 1, kind: input, shape index: {}]   ;;  %s1811_s2 = inlined_call_operand.vmem [shape: f32[1,32], index: 2, kind: input, shape index: {}]   ;;  %s1812_s3 = inlined_call_operand.vmem [shape: f32[32,32], index: 3, kind: input, shape index: {}]   ;;  %s1813_s4 = inlined_call_operand.vmem [shape: f32[1,32], index: 4, kind: input, shape index: {}]   ;;  %s1814_s5 = inlined_call_operand.vmem [shape: f32[32,32], index: 5, kind: input, shape index: {}]   ;;  %s1815_s6 = inlined_call_operand.vmem [shape: f32[1,32], index: 6, kind: input, shape index: {}]   ;;  %s1816_s7 = inlined_call_operand.vmem [shape: f32[32,128], index: 7, kind: input, shape index: {}]   ;;  %s1817_s8 = inlined_call_operand.vmem [shape: f32[1,128], index: 8, kind: input, shape index: {}]   ;;  %s1818_s9 = inlined_call_operand.hbm [shape: f32[256,128], index: 9, kind: output, shape index: {}]  }
   0x1   :  { %16 = vsyncpa [#allocation3 + $0x1], 0  ;;  %s1422_s30 = smov 0   ;;  %s1424_s10 = smov 0  }
   0x2   :  { %s1426_s11 = smov 0   ;;  %s1428_s12 = smov 0  }
   0x3 LB: > { %s1443_s13 = sadd.s32 4294967295, %s1368_s12   ;;  %s1120_s14 = sadd.s32 4294967294, %s1368_s12   ;;  %s1368_s12 = sphi %s1428_s12, %s1824_s12   ;;  %s1364_s11 = sphi %s1426_s11, %s1823_s11   ;;  %s1360_s10 = sphi %s1424_s10, %s1822_s10   ;;  %s1356_s30 = sphi %s1422_s30, %s1821_s30  }
   0x4   : > { %s1447_s15 = sadd.s32 1, %s1368_s12   ;;  %s223_s16 = sadd.s32 1, %s1364_s11 }
   0x5   : > { %s220_s17 = ssub.s32 %s1368_s12, %s1447_s15  ;;  %p233_p0 = scmp.ne.s32.totalorder %s1364_s11, %s1360_s10 }
   0x6   : > { %p221_p1 = scmp.eq.s32.totalorder %s220_s17, 0  ;;  %p234_p2 = scmp.eq.s32.totalorder %s1443_s13, 1 }
   0x7   : > { %p239_p3 = scmp.ne.s32.totalorder %s1360_s10, %s1356_s30  ;;  %p240_p4 = scmp.eq.s32.totalorder %s1120_s14, 1 }
   0x8   : > { %s1458_s18 = scalar_select %p221_p1, %s1364_s11, %s223_s16  }
   0x9   : > { %p1460_p5 = por %p234_p2, %p233_p0  ;;  %p1464_p6 = por %p240_p4, %p239_p3 }
   0xa   : > { %p1123_p7 = scmp.ge.s32.totalorder %s1368_s12, 1  ;;  %p291_p8 = scmp.lt.s32.totalorder %s1368_s12, 3 }
   0xc   : > { %p292_p9 = pnand %p1123_p7, %p291_p8 }
   0xd   : > { %s1125_s25 = sshll.u32 (!%p292_p9), %s1443_s13, 4 }
   0xe   : > { %295 = sbr.rel (%p292_p9) target bundleno = 929 (0x3a1), region = 56  ;;  %p328_p10 = scmp.lt.s32.totalorder (!%p292_p9), %s1125_s25, 31 }
  0x13   : > { %v351_v0 = vld [vmem:[%s1810_s1 + $0x8] sm:$0xff]  ;;  %v350_v1 = vld [vmem:[%s1810_s1] sm:$0xff]  ;;  %s1826_s25 = smov (!%p328_p10, %s1125_s25), 31  ;;  %vm356_vm0 = vcmask 130048   ;;  %v489_v14 = vld [vmem:[%s1812_s3 + $0x18] sm:$0xff]  ;;  %vm494_vm1 = vcmask 261120  }
  0x14   : > { %419 = vmatpush.msra.mxu0 %v351_v0  ;;  %s1126_s26 = sshll.u32 %s1826_s25, 3  ;;  %555 = vmatpush.msra.mxu1 %v489_v14  ;;  %v488_v15 = vld [vmem:[%s1812_s3 + $0x10] sm:$0xff]  ;;  %v487_v17 = vld [vmem:[%s1812_s3 + $0x8] sm:$0xff]  ;;  %v486_v18 = vld [vmem:[%s1812_s3] sm:$0xff] }
  0x15   : > { %s1480_s29 = scalar_lea.vmem %s1809_s0, %s1126_s26  ;;  %v1529_v22 = vld [vmem:[%s1811_s2] ss:$0 sm:$0xff]  ;;  %v627_v59 = vld [vmem:[%s1814_s5 + $0x18] sm:$0xff]  ;;  %v626_v62 = vld [vmem:[%s1814_s5 + $0x10] sm:$0xff]  ;;  %s324_s26 = sand.u32 1, %s1360_s10  }
  0x16   : > { %420 = vmatpush.msra.mxu0 %v350_v1  ;;  %v334_v2 = vld [vmem:[%s1480_s29] sm:$0xff]  ;;  %v335_v3 = vld [vmem:[%s1480_s29 + $0x8] sm:$0xff]  ;;  %v336_v4 = vld [vmem:[%s1480_s29 + $0x10] sm:$0xff]  ;;  %556 = vmatpush.msra.mxu1 %v488_v15  ;;  %s1124_s27 = sshll.u32 %s324_s26, 7 }
  0x17   : > { %1127 = vmatmul.msk.f32.vlgmr.msra.gmra.mxu0 %vm356_vm0, %v334_v2  ;;  %v337_v5 = vld [vmem:[%s1480_s29 + $0x18] sm:$0xff]  ;;  %v338_v6 = vld [vmem:[%s1480_s29 + $0x20] sm:$0xff]  ;;  %v339_v7 = vld [vmem:[%s1480_s29 + $0x28] sm:$0xff]  ;;  %692 = vmatpush.msra.mxu2 %v627_v59  ;;  %s1742_s28 = scalar_lea.vmem [#allocation2], %s1124_s27 }
  0x18   : > { %v340_v8 = vld [vmem:[%s1480_s29 + $0x30] sm:$0xff]  ;;  %v341_v9 = vld [vmem:[%s1480_s29 + $0x38] sm:$0xff]  ;;  %v342_v10 = vld [vmem:[%s1480_s29 + $0x40] sm:$0xff]  ;;  %557 = vmatpush.msra.mxu1 %v487_v17  ;;  %s1055_s21 = sshll.u32 %s1742_s28, 4  ;;  %s1056_s21 = int_to_ptr.vmem [resolvable:$true] %s1055_s21 }
  0x19   : > { %v343_v11 = vld [vmem:[%s1480_s29 + $0x48] sm:$0xff]  ;;  %v344_v12 = vld [vmem:[%s1480_s29 + $0x50] sm:$0xff]  ;;  %v345_v13 = vld [vmem:[%s1480_s29 + $0x58] sm:$0xff]  ;;  %693 = vmatpush.msra.mxu2 %v626_v62 }
  0x1a   : > { %v346_v16 = vld [vmem:[%s1480_s29 + $0x60] sm:$0xff]  ;;  %558 = vmatpush.msra.mxu1 %v486_v18  ;;  %v347_v19 = vld [vmem:[%s1480_s29 + $0x68] sm:$0xff]  ;;  %v348_v20 = vld [vmem:[%s1480_s29 + $0x70] sm:$0xff] }
  0x1b   : > { %v349_v21 = vld [vmem:[%s1480_s29 + $0x78] sm:$0xff]  ;;  %v625_v0 = vld [vmem:[%s1814_s5 + $0x8] sm:$0xff]  ;;  %v624_v1 = vld [vmem:[%s1814_s5] sm:$0xff]  ;;  %s1196_s29 = sshll.u32 %s1443_s13, 7  ;;  %s1043_s13 = scalar_lea.sflag [#allocation3], %s324_s26 }
  0x1c   : > { %694 = vmatpush.msra.mxu2 %v625_v0  ;;  %v1240_v0 = vld [vmem:[%s1815_s6] ss:$0 sm:$0xff]  ;;  %s1054_s17 = scalar_lea.hbm %s1818_s9, %s1196_s29  ;;  %s1326_s29 = scalar_lea.hbm %s1818_s9, 256 }
  0x1d   : > { %s1057_s22 = sshll.u32 %s1054_s17, 4  ;;  %s1058_s22 = int_to_ptr.hbm [resolvable:$true] %s1057_s22 }
  0x1e   : > { %695 = vmatpush.msra.mxu2 %v624_v1  ;;  %s1320_s23 = sshra.s32 %s1058_s22, 4  ;;  %s1321_s23 = int_to_ptr.hbm [resolvable:$true] %s1320_s23 }
  0x1f   : > { %1128 = vmatmul.msk.f32.gmra.mxu0 %vm356_vm0, %v335_v3  ;;  %s1322_s24 = scalar_lea.hbm %s1321_s23, 128  ;;  %p1327_p0 = scmp.lt.s32.totalorder %s1321_s23, %s1818_s9 }
  0x20   : > { %p1323_p11 = scmp.ne.s32.totalorder %s1321_s23, %s1322_s24  ;;  %p1328_p1 = scmp.lt.s32.totalorder %s1326_s29, %s1322_s24 }
  0x22   : > { %p1324_p12 = pnand %p1323_p11, %p1460_p5  ;;  %p1329_p2 = por %p1328_p1, %p1327_p0 }
  0x24   : > { %p1325_p13 = pneg %p1324_p12 }
  0x26   : > { %p1330_p3 = pnand %p1329_p2, %p1325_p13 }
  0x27   : > { %1129 = vmatmul.msk.f32.gmra.mxu0 %vm356_vm0, %v336_v4 }
  0x2f   : > { %1130 = vmatmul.msk.f32.gmra.mxu0 %vm356_vm0, %v337_v5 }
  0x37   : > { %1131 = vmatmul.msk.f32.gmra.mxu0 %vm356_vm0, %v338_v6 }
  0x3f   : > { %1132 = vmatmul.msk.f32.gmra.mxu0 %vm356_vm0, %v339_v7 }
  0x47   : > { %1133 = vmatmul.msk.f32.gmra.mxu0 %vm356_vm0, %v340_v8 }
  0x4f   : > { %1134 = vmatmul.msk.f32.gmra.mxu0 %vm356_vm0, %v341_v9 }
  0x57   : > { %1135 = vmatmul.msk.f32.gmra.mxu0 %vm356_vm0, %v342_v10 }
  0x5f   : > { %1136 = vmatmul.msk.f32.gmra.mxu0 %vm356_vm0, %v343_v11  ;;  %v1578_v11 = vld [vmem:[%s1813_s4] ss:$0 sm:$0xff] }
  0x67   : > { %1137 = vmatmul.msk.f32.gmra.mxu0 %vm356_vm0, %v344_v12 }
  0x6f   : > { %1138 = vmatmul.msk.f32.gmra.mxu0 %vm356_vm0, %v345_v13 }
  0x77   : > { %1139 = vmatmul.msk.f32.gmra.mxu0 %vm356_vm0, %v346_v16 }
  0x7f   : > { %1140 = vmatmul.msk.f32.gmra.mxu0 %vm356_vm0, %v347_v19 }
  0x87   : > { %1141 = vmatmul.msk.f32.gmra.mxu0 %vm356_vm0, %v348_v20 }
  0x8f   : > { %1142 = vmatmul.msk.f32.gmra.mxu0 %vm356_vm0, %v349_v21 }
  0x94   : > { %v422_v23 = vpop.f32.mrf.mxu0 }
  0x95   : > { %v423_v24 = vadd.f32 %v1529_v22, %v422_v23 }
  0x97   : > { %v470_v25 = vmax.f32 %v423_v24, 0.0 }
  0x99   : > { %1143 = vmatmul.msk.f32.vlgmr.msra.gmra.mxu1 %vm494_vm1, %v470_v25 }
  0x9c   : > { %v425_v26 = vpop.f32.mrf.mxu0 }
  0x9d   : > { %v426_v27 = vadd.f32 %v1529_v22, %v425_v26 }
  0x9f   : > { %v471_v28 = vmax.f32 %v426_v27, 0.0 }
  0xa1   : > { %1144 = vmatmul.msk.f32.gmra.mxu1 %vm494_vm1, %v471_v28 }
  0xa4   : > { %v428_v29 = vpop.f32.mrf.mxu0 }
  0xa5   : > { %v429_v30 = vadd.f32 %v1529_v22, %v428_v29 }
  0xa7   : > { %v472_v31 = vmax.f32 %v429_v30, 0.0 }
  0xa9   : > { %1145 = vmatmul.msk.f32.gmra.mxu1 %vm494_vm1, %v472_v31 }
  0xac   : > { %v431_v32 = vpop.f32.mrf.mxu0 }
  0xad   : > { %v432_v33 = vadd.f32 %v1529_v22, %v431_v32 }
  0xaf   : > { %v473_v34 = vmax.f32 %v432_v33, 0.0 }
  0xb1   : > { %1146 = vmatmul.msk.f32.gmra.mxu1 %vm494_vm1, %v473_v34 }
  0xb4   : > { %v434_v35 = vpop.f32.mrf.mxu0 }
  0xb5   : > { %v435_v36 = vadd.f32 %v1529_v22, %v434_v35 }
  0xb7   : > { %v474_v37 = vmax.f32 %v435_v36, 0.0 }
  0xb9   : > { %1147 = vmatmul.msk.f32.gmra.mxu1 %vm494_vm1, %v474_v37 }
  0xbc   : > { %v437_v38 = vpop.f32.mrf.mxu0 }
  0xbd   : > { %v438_v39 = vadd.f32 %v1529_v22, %v437_v38 }
  0xbf   : > { %v475_v40 = vmax.f32 %v438_v39, 0.0 }
  0xc1   : > { %1148 = vmatmul.msk.f32.gmra.mxu1 %vm494_vm1, %v475_v40 }
  0xc4   : > { %v440_v41 = vpop.f32.mrf.mxu0 }
  0xc5   : > { %v441_v42 = vadd.f32 %v1529_v22, %v440_v41 }
  0xc7   : > { %v476_v43 = vmax.f32 %v441_v42, 0.0 }
  0xc9   : > { %1149 = vmatmul.msk.f32.gmra.mxu1 %vm494_vm1, %v476_v43 }
  0xcc   : > { %v443_v44 = vpop.f32.mrf.mxu0 }
  0xcd   : > { %v444_v45 = vadd.f32 %v1529_v22, %v443_v44 }
  0xcf   : > { %v477_v46 = vmax.f32 %v444_v45, 0.0 }
  0xd1   : > { %1150 = vmatmul.msk.f32.gmra.mxu1 %vm494_vm1, %v477_v46 }
  0xd4   : > { %v446_v47 = vpop.f32.mrf.mxu0 }
  0xd5   : > { %v447_v48 = vadd.f32 %v1529_v22, %v446_v47 }
  0xd7   : > { %v478_v49 = vmax.f32 %v447_v48, 0.0  ;;  %v764_v48 = vld [vmem:[%s1816_s7 + $0x18] sm:$0xff] }
  0xd8   : > { %829 = vmatpush.msra.mxu3 %v764_v48 }
  0xd9   : > { %1151 = vmatmul.msk.f32.gmra.mxu1 %vm494_vm1, %v478_v49 }
  0xdc   : > { %v449_v50 = vpop.f32.mrf.mxu0 }
  0xdd   : > { %v450_v51 = vadd.f32 %v1529_v22, %v449_v50 }
  0xdf   : > { %v479_v52 = vmax.f32 %v450_v51, 0.0 }
  0xe1   : > { %1152 = vmatmul.msk.f32.gmra.mxu1 %vm494_vm1, %v479_v52  ;;  %v763_v52 = vld [vmem:[%s1816_s7 + $0x10] sm:$0xff] }
  0xe2   : > { %830 = vmatpush.msra.mxu3 %v763_v52 }
  0xe4   : > { %v452_v53 = vpop.f32.mrf.mxu0 }
  0xe5   : > { %v453_v54 = vadd.f32 %v1529_v22, %v452_v53 }
  0xe7   : > { %v480_v55 = vmax.f32 %v453_v54, 0.0 }
  0xe9   : > { %1153 = vmatmul.msk.f32.gmra.mxu1 %vm494_vm1, %v480_v55  ;;  %v762_v55 = vld [vmem:[%s1816_s7 + $0x8] sm:$0xff] }
  0xea   : > { %831 = vmatpush.msra.mxu3 %v762_v55 }
  0xec   : > { %v455_v56 = vpop.f32.mrf.mxu0 }
  0xed   : > { %v456_v57 = vadd.f32 %v1529_v22, %v455_v56 }
  0xef   : > { %v481_v58 = vmax.f32 %v456_v57, 0.0  ;;  %v761_v57 = vld [vmem:[%s1816_s7] sm:$0xff] }
  0xf0   : > { %832 = vmatpush.msra.mxu3 %v761_v57 }
  0xf1   : > { %1154 = vmatmul.msk.f32.gmra.mxu1 %vm494_vm1, %v481_v58 }
  0xf4   : > { %v458_v60 = vpop.f32.mrf.mxu0 }
  0xf5   : > { %v459_v61 = vadd.f32 %v1529_v22, %v458_v60 }
  0xf7   : > { %v482_v63 = vmax.f32 %v459_v61, 0.0 }
  0xf9   : > { %1155 = vmatmul.msk.f32.gmra.mxu1 %vm494_vm1, %v482_v63 }
  0xfc   : > { %v461_v2 = vpop.f32.mrf.mxu0 }
  0xfd   : > { %v462_v3 = vadd.f32 %v1529_v22, %v461_v2 }
  0xff   : > { %v483_v4 = vmax.f32 %v462_v3, 0.0 }
 0x101   : > { %1156 = vmatmul.msk.f32.gmra.mxu1 %vm494_vm1, %v483_v4 }
 0x104   : > { %v464_v5 = vpop.f32.mrf.mxu0 }
 0x105   : > { %v465_v6 = vadd.f32 %v1529_v22, %v464_v5 }
 0x107   : > { %v484_v7 = vmax.f32 %v465_v6, 0.0 }
 0x109   : > { %1157 = vmatmul.msk.f32.gmra.mxu1 %vm494_vm1, %v484_v7 }
 0x10c   : > { %v467_v8 = vpop.f32.mrf.mxu0 }
 0x10d   : > { %v468_v9 = vadd.f32 %v1529_v22, %v467_v8 }
 0x10f   : > { %v485_v10 = vmax.f32 %v468_v9, 0.0 }
 0x111   : > { %1158 = vmatmul.msk.f32.gmra.mxu1 %vm494_vm1, %v485_v10 }
 0x116   : > { %v560_v12 = vpop.f32.mrf.mxu1 }
 0x117   : > { %v561_v13 = vadd.f32 %v1578_v11, %v560_v12 }
 0x119   : > { %v608_v14 = vmax.f32 %v561_v13, 0.0 }
 0x11b   : > { %1159 = vmatmul.msk.f32.vlgmr.msra.gmra.mxu2 %vm494_vm1, %v608_v14 }
 0x11e   : > { %v563_v15 = vpop.f32.mrf.mxu1 }
 0x11f   : > { %v564_v16 = vadd.f32 %v1578_v11, %v563_v15 }
 0x121   : > { %v609_v17 = vmax.f32 %v564_v16, 0.0 }
 0x123   : > { %1160 = vmatmul.msk.f32.gmra.mxu2 %vm494_vm1, %v609_v17 }
 0x126   : > { %v566_v18 = vpop.f32.mrf.mxu1 }
 0x127   : > { %v567_v19 = vadd.f32 %v1578_v11, %v566_v18 }
 0x129   : > { %v610_v20 = vmax.f32 %v567_v19, 0.0 }
 0x12b   : > { %1161 = vmatmul.msk.f32.gmra.mxu2 %vm494_vm1, %v610_v20 }
 0x12e   : > { %v569_v21 = vpop.f32.mrf.mxu1 }
 0x12f   : > { %v570_v22 = vadd.f32 %v1578_v11, %v569_v21 }
 0x131   : > { %v611_v23 = vmax.f32 %v570_v22, 0.0 }
 0x133   : > { %1162 = vmatmul.msk.f32.gmra.mxu2 %vm494_vm1, %v611_v23 }
 0x136   : > { %v572_v24 = vpop.f32.mrf.mxu1 }
 0x137   : > { %v573_v25 = vadd.f32 %v1578_v11, %v572_v24 }
 0x139   : > { %v612_v26 = vmax.f32 %v573_v25, 0.0 }
 0x13b   : > { %1163 = vmatmul.msk.f32.gmra.mxu2 %vm494_vm1, %v612_v26 }
 0x13e   : > { %v575_v27 = vpop.f32.mrf.mxu1 }
 0x13f   : > { %v576_v28 = vadd.f32 %v1578_v11, %v575_v27 }
 0x141   : > { %v613_v29 = vmax.f32 %v576_v28, 0.0 }
 0x143   : > { %1164 = vmatmul.msk.f32.gmra.mxu2 %vm494_vm1, %v613_v29 }
 0x146   : > { %v578_v30 = vpop.f32.mrf.mxu1 }
 0x147   : > { %v579_v31 = vadd.f32 %v1578_v11, %v578_v30 }
 0x149   : > { %v614_v32 = vmax.f32 %v579_v31, 0.0 }
 0x14b   : > { %1165 = vmatmul.msk.f32.gmra.mxu2 %vm494_vm1, %v614_v32 }
 0x14e   : > { %v581_v33 = vpop.f32.mrf.mxu1 }
 0x14f   : > { %v582_v34 = vadd.f32 %v1578_v11, %v581_v33 }
 0x151   : > { %v615_v35 = vmax.f32 %v582_v34, 0.0 }
 0x153   : > { %1166 = vmatmul.msk.f32.gmra.mxu2 %vm494_vm1, %v615_v35 }
 0x156   : > { %v584_v36 = vpop.f32.mrf.mxu1 }
 0x157   : > { %v585_v37 = vadd.f32 %v1578_v11, %v584_v36 }
 0x159   : > { %v616_v38 = vmax.f32 %v585_v37, 0.0 }
 0x15b   : > { %1167 = vmatmul.msk.f32.gmra.mxu2 %vm494_vm1, %v616_v38 }
 0x15e   : > { %v587_v39 = vpop.f32.mrf.mxu1 }
 0x15f   : > { %v588_v40 = vadd.f32 %v1578_v11, %v587_v39 }
 0x161   : > { %v617_v41 = vmax.f32 %v588_v40, 0.0 }
 0x163   : > { %1168 = vmatmul.msk.f32.gmra.mxu2 %vm494_vm1, %v617_v41 }
 0x166   : > { %v590_v42 = vpop.f32.mrf.mxu1 }
 0x167   : > { %v591_v43 = vadd.f32 %v1578_v11, %v590_v42 }
 0x169   : > { %v618_v44 = vmax.f32 %v591_v43, 0.0 }
 0x16b   : > { %1169 = vmatmul.msk.f32.gmra.mxu2 %vm494_vm1, %v618_v44 }
 0x16e   : > { %v593_v45 = vpop.f32.mrf.mxu1 }
 0x16f   : > { %v594_v46 = vadd.f32 %v1578_v11, %v593_v45 }
 0x171   : > { %v619_v47 = vmax.f32 %v594_v46, 0.0 }
 0x173   : > { %1170 = vmatmul.msk.f32.gmra.mxu2 %vm494_vm1, %v619_v47 }
 0x176   : > { %v596_v49 = vpop.f32.mrf.mxu1 }
 0x177   : > { %v597_v50 = vadd.f32 %v1578_v11, %v596_v49  ;;  %v1241_v49 = vld [vmem:[%s1817_s8] ss:$0 sm:$0xff] }
 0x179   : > { %v620_v51 = vmax.f32 %v597_v50, 0.0 }
 0x17b   : > { %1171 = vmatmul.msk.f32.gmra.mxu2 %vm494_vm1, %v620_v51 }
 0x17e   : > { %v599_v53 = vpop.f32.mrf.mxu1 }
 0x17f   : > { %v600_v54 = vadd.f32 %v1578_v11, %v599_v53 }
 0x181   : > { %v621_v56 = vmax.f32 %v600_v54, 0.0 }
 0x183   : > { %1172 = vmatmul.msk.f32.gmra.mxu2 %vm494_vm1, %v621_v56 }
 0x186   : > { %v602_v58 = vpop.f32.mrf.mxu1 }
 0x187   : > { %v603_v59 = vadd.f32 %v1578_v11, %v602_v58 }
 0x189   : > { %v622_v60 = vmax.f32 %v603_v59, 0.0 }
 0x18b   : > { %1173 = vmatmul.msk.f32.gmra.mxu2 %vm494_vm1, %v622_v60 }
 0x18e   : > { %v605_v61 = vpop.f32.mrf.mxu1 }
 0x18f   : > { %v606_v62 = vadd.f32 %v1578_v11, %v605_v61 }
 0x191   : > { %v623_v63 = vmax.f32 %v606_v62, 0.0 }
 0x193   : > { %1174 = vmatmul.msk.f32.gmra.mxu2 %vm494_vm1, %v623_v63 }
 0x19e   : > { %v697_v1 = vpop.f32.mrf.mxu2 }
 0x19f   : > { %v698_v2 = vadd.f32 %v1240_v0, %v697_v1 }
 0x1a1   : > { %v745_v3 = vmax.f32 %v698_v2, 0.0 }
 0x1a3   : > { %1175 = vmatmul.msk.f32.vlgmr.msra.gmra.mxu3 %vm494_vm1, %v745_v3 }
 0x1a6   : > { %v700_v4 = vpop.f32.mrf.mxu2 }
 0x1a7   : > { %v701_v5 = vadd.f32 %v1240_v0, %v700_v4 }
 0x1a9   : > { %v746_v6 = vmax.f32 %v701_v5, 0.0 }
 0x1ab   : > { %1176 = vmatmul.msk.f32.gmra.mxu3 %vm494_vm1, %v746_v6 }
 0x1ae   : > { %v703_v7 = vpop.f32.mrf.mxu2 }
 0x1af   : > { %v704_v8 = vadd.f32 %v1240_v0, %v703_v7 }
 0x1b1   : > { %v747_v9 = vmax.f32 %v704_v8, 0.0 }
 0x1b3   : > { %1177 = vmatmul.msk.f32.gmra.mxu3 %vm494_vm1, %v747_v9 }
 0x1b6   : > { %v706_v10 = vpop.f32.mrf.mxu2 }
 0x1b7   : > { %v707_v11 = vadd.f32 %v1240_v0, %v706_v10 }
 0x1b9   : > { %v748_v12 = vmax.f32 %v707_v11, 0.0 }
 0x1bb   : > { %1178 = vmatmul.msk.f32.gmra.mxu3 %vm494_vm1, %v748_v12 }
 0x1be   : > { %v709_v13 = vpop.f32.mrf.mxu2 }
 0x1bf   : > { %v710_v14 = vadd.f32 %v1240_v0, %v709_v13 }
 0x1c1   : > { %v749_v15 = vmax.f32 %v710_v14, 0.0 }
 0x1c3   : > { %1179 = vmatmul.msk.f32.gmra.mxu3 %vm494_vm1, %v749_v15 }
 0x1c6   : > { %v712_v16 = vpop.f32.mrf.mxu2 }
 0x1c7   : > { %v713_v17 = vadd.f32 %v1240_v0, %v712_v16 }
 0x1c9   : > { %v750_v18 = vmax.f32 %v713_v17, 0.0 }
 0x1cb   : > { %1180 = vmatmul.msk.f32.gmra.mxu3 %vm494_vm1, %v750_v18 }
 0x1ce   : > { %v715_v19 = vpop.f32.mrf.mxu2 }
 0x1cf   : > { %v716_v20 = vadd.f32 %v1240_v0, %v715_v19 }
 0x1d1   : > { %v751_v21 = vmax.f32 %v716_v20, 0.0 }
 0x1d3   : > { %1181 = vmatmul.msk.f32.gmra.mxu3 %vm494_vm1, %v751_v21 }
 0x1d6   : > { %v718_v22 = vpop.f32.mrf.mxu2 }
 0x1d7   : > { %v719_v23 = vadd.f32 %v1240_v0, %v718_v22 }
 0x1d9   : > { %v752_v24 = vmax.f32 %v719_v23, 0.0 }
 0x1db   : > { %1182 = vmatmul.msk.f32.gmra.mxu3 %vm494_vm1, %v752_v24 }
 0x1de   : > { %v721_v25 = vpop.f32.mrf.mxu2 }
 0x1df   : > { %v722_v26 = vadd.f32 %v1240_v0, %v721_v25 }
 0x1e1   : > { %v753_v27 = vmax.f32 %v722_v26, 0.0 }
 0x1e3   : > { %1183 = vmatmul.msk.f32.gmra.mxu3 %vm494_vm1, %v753_v27 }
 0x1e6   : > { %v724_v28 = vpop.f32.mrf.mxu2 }
 0x1e7   : > { %v725_v29 = vadd.f32 %v1240_v0, %v724_v28 }
 0x1e9   : > { %v754_v30 = vmax.f32 %v725_v29, 0.0 }
 0x1eb   : > { %1184 = vmatmul.msk.f32.gmra.mxu3 %vm494_vm1, %v754_v30 }
 0x1ee   : > { %v727_v31 = vpop.f32.mrf.mxu2 }
 0x1ef   : > { %v728_v32 = vadd.f32 %v1240_v0, %v727_v31 }
 0x1f1   : > { %v755_v33 = vmax.f32 %v728_v32, 0.0 }
 0x1f3   : > { %1185 = vmatmul.msk.f32.gmra.mxu3 %vm494_vm1, %v755_v33 }
 0x1f6   : > { %v730_v34 = vpop.f32.mrf.mxu2 }
 0x1f7   : > { %v731_v35 = vadd.f32 %v1240_v0, %v730_v34 }
 0x1f9   : > { %v756_v36 = vmax.f32 %v731_v35, 0.0 }
 0x1fb   : > { %1186 = vmatmul.msk.f32.gmra.mxu3 %vm494_vm1, %v756_v36 }
 0x1fe   : > { %v733_v37 = vpop.f32.mrf.mxu2 }
 0x1ff   : > { %v734_v38 = vadd.f32 %v1240_v0, %v733_v37 }
 0x201   : > { %v757_v39 = vmax.f32 %v734_v38, 0.0 }
 0x203   : > { %1187 = vmatmul.msk.f32.gmra.mxu3 %vm494_vm1, %v757_v39 }
 0x206   : > { %v736_v40 = vpop.f32.mrf.mxu2 }
 0x207   : > { %v737_v41 = vadd.f32 %v1240_v0, %v736_v40 }
 0x209   : > { %v758_v42 = vmax.f32 %v737_v41, 0.0 }
 0x20b   : > { %1188 = vmatmul.msk.f32.gmra.mxu3 %vm494_vm1, %v758_v42 }
 0x20e   : > { %v739_v43 = vpop.f32.mrf.mxu2 }
 0x20f   : > { %v740_v44 = vadd.f32 %v1240_v0, %v739_v43 }
 0x211   : > { %v759_v45 = vmax.f32 %v740_v44, 0.0 }
 0x213   : > { %1189 = vmatmul.msk.f32.gmra.mxu3 %vm494_vm1, %v759_v45 }
 0x216   : > { %v742_v46 = vpop.f32.mrf.mxu2 }
 0x217   : > { %v743_v47 = vadd.f32 %v1240_v0, %v742_v46 }
 0x219   : > { %v760_v48 = vmax.f32 %v743_v47, 0.0 }
 0x21b   : > { %1190 = vmatmul.msk.f32.gmra.mxu3 %vm494_vm1, %v760_v48 }
 0x226   : > { %v834_v50 = vpop.f32.mrf.mxu3 }
 0x227   : > { %v835_v51 = vadd.f32 %v1241_v49, %v834_v50 }
 0x229   : > { %882 = vmax.xlane.f32.xlu0 %v835_v51 }
 0x22e   : > { %v837_v52 = vpop.f32.mrf.mxu3 }
 0x22f   : > { %v838_v53 = vadd.f32 %v1241_v49, %v837_v52 }
 0x231   : > { %884 = vmax.xlane.f32.xlu0 %v838_v53 }
 0x236   : > { %v840_v54 = vpop.f32.mrf.mxu3 }
 0x237   : > { %v841_v55 = vadd.f32 %v1241_v49, %v840_v54 }
 0x239   : > { %886 = vmax.xlane.f32.xlu1 %v841_v55 }
 0x23e   : > { %v843_v56 = vpop.f32.mrf.mxu3 }
 0x23f   : > { %v844_v57 = vadd.f32 %v1241_v49, %v843_v56 }
 0x241   : > { %888 = vmax.xlane.f32.xlu1 %v844_v57 }
 0x246   : > { %v846_v58 = vpop.f32.mrf.mxu3 }
 0x247   : > { %v847_v59 = vadd.f32 %v1241_v49, %v846_v58 }
 0x249   : > { %890 = vmax.xlane.f32.xlu2 %v847_v59 }
 0x24e   : > { %v849_v60 = vpop.f32.mrf.mxu3 }
 0x24f   : > { %v1646_v61 = vadd.f32 %v1241_v49, %v849_v60 }
 0x251   : > { %892 = vmax.xlane.f32.xlu2 %v1646_v61 }
 0x256   : > { %v852_v62 = vpop.f32.mrf.mxu3 }
 0x257   : > { %v1649_v63 = vadd.f32 %v1241_v49, %v852_v62 }
 0x259   : > { %894 = vmax.xlane.f32.xlu0 %v1649_v63 }
 0x25e   : > { %v855_v0 = vpop.f32.mrf.mxu3 }
 0x25f   : > { %v1652_v1 = vadd.f32 %v1241_v49, %v855_v0 }
 0x261   : > { %896 = vmax.xlane.f32.xlu1 %v1652_v1 }
 0x266   : > { %v858_v2 = vpop.f32.mrf.mxu3 }
 0x267   : > { %v1655_v3 = vadd.f32 %v1241_v49, %v858_v2 }
 0x269   : > { %898 = vmax.xlane.f32.xlu2 %v1655_v3 }
 0x26e   : > { %v861_v4 = vpop.f32.mrf.mxu3 }
 0x26f   : > { %v1658_v5 = vadd.f32 %v1241_v49, %v861_v4 }
 0x271   : > { %900 = vmax.xlane.f32.xlu0 %v1658_v5 }
 0x276   : > { %v864_v6 = vpop.f32.mrf.mxu3 }
 0x277   : > { %v1661_v7 = vadd.f32 %v1241_v49, %v864_v6 }
 0x279   : > { %902 = vmax.xlane.f32.xlu1 %v1661_v7 }
 0x27e   : > { %v867_v8 = vpop.f32.mrf.mxu3 }
 0x27f   : > { %v1664_v9 = vadd.f32 %v1241_v49, %v867_v8 }
 0x281   : > { %904 = vmax.xlane.f32.xlu2 %v1664_v9 }
 0x286   : > { %v870_v10 = vpop.f32.mrf.mxu3 }
 0x287   : > { %v1667_v11 = vadd.f32 %v1241_v49, %v870_v10 }
 0x289   : > { %906 = vmax.xlane.f32.xlu0 %v1667_v11 }
 0x28e   : > { %v873_v12 = vpop.f32.mrf.mxu3 }
 0x28f   : > { %v1670_v13 = vadd.f32 %v1241_v49, %v873_v12 }
 0x291   : > { %908 = vmax.xlane.f32.xlu1 %v1670_v13 }
 0x296   : > { %v876_v14 = vpop.f32.mrf.mxu3 }
 0x297   : > { %v1673_v15 = vadd.f32 %v1241_v49, %v876_v14 }
 0x299   : > { %910 = vmax.xlane.f32.xlu2 %v1673_v15 }
 0x29c   : > { %v883_v16 = vpop.xlane.xlu0 %882 }
 0x29d   : > { %v914_v17 = vsub.f32 %v835_v51, %v883_v16 }
 0x29e   : > { %v879_v18 = vpop.f32.mrf.mxu3 }
 0x29f   : > { %v930_v19 = vmul.f32 1.442695, %v914_v17  ;;  %v1676_v20 = vadd.f32 %v1241_v49, %v879_v18 }
 0x2a1   : > { %1242 = vpow2.f32 %v930_v19  ;;  %912 = vmax.xlane.f32.xlu0 %v1676_v20 }
 0x2a4   : > { %v885_v21 = vpop.xlane.xlu0 %884 }
 0x2a5   : > { %v915_v22 = vsub.f32 %v838_v53, %v885_v21 }
 0x2a7   : > { %v1679_v23 = vpop.eup %1242  ;;  %v932_v24 = vmul.f32 1.442695, %v915_v22 }
 0x2a8   : > { %962 = vadd.xlane.f32.xlu1 %v1679_v23 }
 0x2a9   : > { %1244 = vpow2.f32 %v932_v24 }
 0x2ac   : > { %v887_v25 = vpop.xlane.xlu1 %886 }
 0x2ad   : > { %v916_v26 = vsub.f32 %v841_v55, %v887_v25 }
 0x2af   : > { %v1682_v27 = vpop.eup %1244  ;;  %v934_v28 = vmul.f32 1.442695, %v916_v26 }
 0x2b0   : > { %964 = vadd.xlane.f32.xlu2 %v1682_v27 }
 0x2b1   : > { %1246 = vpow2.f32 %v934_v28 }
 0x2b4   : > { %v889_v29 = vpop.xlane.xlu1 %888 }
 0x2b5   : > { %v917_v30 = vsub.f32 %v844_v57, %v889_v29 }
 0x2b7   : > { %v1685_v31 = vpop.eup %1246  ;;  %v936_v32 = vmul.f32 1.442695, %v917_v30 }
 0x2b8   : > { %966 = vadd.xlane.f32.xlu0 %v1685_v31 }
 0x2b9   : > { %1248 = vpow2.f32 %v936_v32 }
 0x2bc   : > { %v891_v33 = vpop.xlane.xlu2 %890 }
 0x2bd   : > { %v918_v34 = vsub.f32 %v847_v59, %v891_v33 }
 0x2bf   : > { %v1688_v35 = vpop.eup %1248  ;;  %v938_v36 = vmul.f32 1.442695, %v918_v34 }
 0x2c0   : > { %968 = vadd.xlane.f32.xlu1 %v1688_v35 }
 0x2c1   : > { %1250 = vpow2.f32 %v938_v36 }
 0x2c4   : > { %v893_v37 = vpop.xlane.xlu2 %892 }
 0x2c5   : > { %v919_v38 = vsub.f32 %v1646_v61, %v893_v37 }
 0x2c7   : > { %v1692_v39 = vpop.eup %1250  ;;  %v940_v40 = vmul.f32 1.442695, %v919_v38 }
 0x2c8   : > { %970 = vadd.xlane.f32.xlu2 %v1692_v39 }
 0x2c9   : > { %1252 = vpow2.f32 %v940_v40 }
 0x2cc   : > { %v895_v41 = vpop.xlane.xlu0 %894 }
 0x2cd   : > { %v920_v42 = vsub.f32 %v1649_v63, %v895_v41 }
 0x2cf   : > { %v1696_v43 = vpop.eup %1252  ;;  %v942_v44 = vmul.f32 1.442695, %v920_v42 }
 0x2d0   : > { %972 = vadd.xlane.f32.xlu0 %v1696_v43 }
 0x2d1   : > { %1254 = vpow2.f32 %v942_v44 }
 0x2d4   : > { %v897_v45 = vpop.xlane.xlu1 %896 }
 0x2d5   : > { %v921_v46 = vsub.f32 %v1652_v1, %v897_v45 }
 0x2d7   : > { %v1700_v47 = vpop.eup %1254  ;;  %v944_v48 = vmul.f32 1.442695, %v921_v46 }
 0x2d8   : > { %974 = vadd.xlane.f32.xlu1 %v1700_v47 }
 0x2d9   : > { %1256 = vpow2.f32 %v944_v48 }
 0x2dc   : > { %v899_v49 = vpop.xlane.xlu2 %898 }
 0x2dd   : > { %v922_v50 = vsub.f32 %v1655_v3, %v899_v49 }
 0x2df   : > { %v1704_v51 = vpop.eup %1256  ;;  %v946_v52 = vmul.f32 1.442695, %v922_v50 }
 0x2e0   : > { %976 = vadd.xlane.f32.xlu2 %v1704_v51 }
 0x2e1   : > { %1258 = vpow2.f32 %v946_v52 }
 0x2e4   : > { %v901_v53 = vpop.xlane.xlu0 %900 }
 0x2e5   : > { %v923_v54 = vsub.f32 %v1658_v5, %v901_v53 }
 0x2e7   : > { %v1708_v55 = vpop.eup %1258  ;;  %v948_v56 = vmul.f32 1.442695, %v923_v54 }
 0x2e8   : > { %978 = vadd.xlane.f32.xlu0 %v1708_v55 }
 0x2e9   : > { %1260 = vpow2.f32 %v948_v56 }
 0x2ec   : > { %v903_v57 = vpop.xlane.xlu1 %902 }
 0x2ed   : > { %v924_v58 = vsub.f32 %v1661_v7, %v903_v57 }
 0x2ef   : > { %v1712_v59 = vpop.eup %1260  ;;  %v950_v60 = vmul.f32 1.442695, %v924_v58 }
 0x2f0   : > { %980 = vadd.xlane.f32.xlu1 %v1712_v59 }
 0x2f1   : > { %1262 = vpow2.f32 %v950_v60 }
 0x2f4   : > { %v905_v61 = vpop.xlane.xlu2 %904 }
 0x2f5   : > { %v925_v62 = vsub.f32 %v1664_v9, %v905_v61 }
 0x2f7   : > { %v1716_v63 = vpop.eup %1262  ;;  %v952_v0 = vmul.f32 1.442695, %v925_v62 }
 0x2f8   : > { %982 = vadd.xlane.f32.xlu2 %v1716_v63 }
 0x2f9   : > { %1264 = vpow2.f32 %v952_v0 }
 0x2fc   : > { %v907_v1 = vpop.xlane.xlu0 %906 }
 0x2fd   : > { %v926_v2 = vsub.f32 %v1667_v11, %v907_v1 }
 0x2ff   : > { %v1720_v3 = vpop.eup %1264  ;;  %v954_v4 = vmul.f32 1.442695, %v926_v2 }
 0x300   : > { %984 = vadd.xlane.f32.xlu0 %v1720_v3 }
 0x301   : > { %1266 = vpow2.f32 %v954_v4 }
 0x304   : > { %v909_v5 = vpop.xlane.xlu1 %908 }
 0x305   : > { %v927_v6 = vsub.f32 %v1670_v13, %v909_v5 }
 0x307   : > { %v1724_v7 = vpop.eup %1266  ;;  %v956_v8 = vmul.f32 1.442695, %v927_v6 }
 0x308   : > { %986 = vadd.xlane.f32.xlu1 %v1724_v7 }
 0x309   : > { %1268 = vpow2.f32 %v956_v8 }
 0x30c   : > { %v911_v9 = vpop.xlane.xlu2 %910 }
 0x30d   : > { %v928_v10 = vsub.f32 %v1673_v15, %v911_v9 }
 0x30f   : > { %v1728_v11 = vpop.eup %1268  ;;  %v958_v12 = vmul.f32 1.442695, %v928_v10 }
 0x310   : > { %988 = vadd.xlane.f32.xlu2 %v1728_v11 }
 0x311   : > { %1270 = vpow2.f32 %v958_v12 }
 0x314   : > { %v913_v14 = vpop.xlane.xlu0 %912 }
 0x315   : > { %v929_v13 = vsub.f32 %v1676_v20, %v913_v14 }
 0x317   : > { %v1732_v16 = vpop.eup %1270  ;;  %v960_v17 = vmul.f32 1.442695, %v929_v13 }
 0x318   : > { %990 = vadd.xlane.f32.xlu0 %v1732_v16 }
 0x319   : > { %1272 = vpow2.f32 %v960_v17 }
 0x31b   : > { %v963_v18 = vpop.xlane.xlu1 %962 }
 0x31c   : > { %1274 = vrcp.f32 %v963_v18 }
 0x31f   : > { %v1736_v19 = vpop.eup %1272 }
 0x320   : > { %992 = vadd.xlane.f32.xlu1 %v1736_v19 }
 0x322   : > { %v1275_v15 = vpop.eup %1274 }
 0x323   : > { %v1010_v21 = vmul.f32 %v1275_v15, %v1679_v23  ;;  %v965_v22 = vpop.xlane.xlu2 %964 }
 0x324   : > { %1276 = vrcp.f32 %v965_v22 }
 0x325   : > { %1026 = vst [vmem:[%s1742_s28] sm:$0xff] %v1010_v21 }
 0x32a   : > { %v1277_v20 = vpop.eup %1276 }
 0x32b   : > { %v1011_v24 = vmul.f32 %v1277_v20, %v1682_v27  ;;  %v967_v25 = vpop.xlane.xlu0 %966 }
 0x32c   : > { %1278 = vrcp.f32 %v967_v25 }
 0x32d   : > { %1027 = vst [vmem:[%s1742_s28 + $0x8] sm:$0xff] %v1011_v24 }
 0x332   : > { %v1279_v26 = vpop.eup %1278 }
 0x333   : > { %v1012_v28 = vmul.f32 %v1279_v26, %v1685_v31  ;;  %v969_v23 = vpop.xlane.xlu1 %968 }
 0x334   : > { %1280 = vrcp.f32 %v969_v23 }
 0x335   : > { %1028 = vst [vmem:[%s1742_s28 + $0x10] sm:$0xff] %v1012_v28 }
 0x33a   : > { %v1281_v29 = vpop.eup %1280 }
 0x33b   : > { %v1013_v30 = vmul.f32 %v1281_v29, %v1688_v35  ;;  %v971_v32 = vpop.xlane.xlu2 %970 }
 0x33c   : > { %1282 = vrcp.f32 %v971_v32 }
 0x33d   : > { %1029 = vst [vmem:[%s1742_s28 + $0x18] sm:$0xff] %v1013_v30 }
 0x342   : > { %v1283_v33 = vpop.eup %1282 }
 0x343   : > { %v1014_v27 = vmul.f32 %v1283_v33, %v1692_v39  ;;  %v973_v34 = vpop.xlane.xlu0 %972 }
 0x344   : > { %1284 = vrcp.f32 %v973_v34 }
 0x345   : > { %1030 = vst [vmem:[%s1742_s28 + $0x20] sm:$0xff] %v1014_v27 }
 0x34a   : > { %v1285_v36 = vpop.eup %1284 }
 0x34b   : > { %v1015_v31 = vmul.f32 %v1285_v36, %v1696_v43  ;;  %v975_v37 = vpop.xlane.xlu1 %974 }
 0x34c   : > { %1286 = vrcp.f32 %v975_v37 }
 0x34d   : > { %1031 = vst [vmem:[%s1742_s28 + $0x28] sm:$0xff] %v1015_v31 }
 0x352   : > { %v1287_v38 = vpop.eup %1286 }
 0x353   : > { %v1016_v35 = vmul.f32 %v1287_v38, %v1700_v47  ;;  %v977_v40 = vpop.xlane.xlu2 %976 }
 0x354   : > { %1288 = vrcp.f32 %v977_v40 }
 0x355   : > { %1032 = vst [vmem:[%s1742_s28 + $0x30] sm:$0xff] %v1016_v35 }
 0x35a   : > { %v1289_v41 = vpop.eup %1288 }
 0x35b   : > { %v1017_v39 = vmul.f32 %v1289_v41, %v1704_v51  ;;  %v979_v42 = vpop.xlane.xlu0 %978 }
 0x35c   : > { %1290 = vrcp.f32 %v979_v42 }
 0x35d   : > { %1033 = vst [vmem:[%s1742_s28 + $0x38] sm:$0xff] %v1017_v39 }
 0x362   : > { %v1291_v44 = vpop.eup %1290 }
 0x363   : > { %v1018_v43 = vmul.f32 %v1291_v44, %v1708_v55  ;;  %v981_v45 = vpop.xlane.xlu1 %980 }
 0x364   : > { %1292 = vrcp.f32 %v981_v45 }
 0x365   : > { %1034 = vst [vmem:[%s1742_s28 + $0x40] sm:$0xff] %v1018_v43 }
 0x36a   : > { %v1293_v46 = vpop.eup %1292 }
 0x36b   : > { %v1019_v47 = vmul.f32 %v1293_v46, %v1712_v59  ;;  %v983_v48 = vpop.xlane.xlu2 %982 }
 0x36c   : > { %1294 = vrcp.f32 %v983_v48 }
 0x36d   : > { %1035 = vst [vmem:[%s1742_s28 + $0x48] sm:$0xff] %v1019_v47 }
 0x372   : > { %v1295_v49 = vpop.eup %1294 }
 0x373   : > { %v1020_v50 = vmul.f32 %v1295_v49, %v1716_v63  ;;  %v985_v51 = vpop.xlane.xlu0 %984 }
 0x374   : > { %1296 = vrcp.f32 %v985_v51 }
 0x375   : > { %1036 = vst [vmem:[%s1742_s28 + $0x50] sm:$0xff] %v1020_v50 }
 0x37a   : > { %v1297_v52 = vpop.eup %1296 }
 0x37b   : > { %v1021_v53 = vmul.f32 %v1297_v52, %v1720_v3  ;;  %v987_v54 = vpop.xlane.xlu1 %986 }
 0x37c   : > { %1298 = vrcp.f32 %v987_v54 }
 0x37d   : > { %1037 = vst [vmem:[%s1742_s28 + $0x58] sm:$0xff] %v1021_v53 }
 0x382   : > { %v1299_v55 = vpop.eup %1298 }
 0x383   : > { %v1022_v56 = vmul.f32 %v1299_v55, %v1724_v7  ;;  %v989_v57 = vpop.xlane.xlu2 %988 }
 0x384   : > { %1300 = vrcp.f32 %v989_v57 }
 0x385   : > { %1038 = vst [vmem:[%s1742_s28 + $0x60] sm:$0xff] %v1022_v56 }
 0x38a   : > { %v1301_v58 = vpop.eup %1300 }
 0x38b   : > { %v1023_v59 = vmul.f32 %v1301_v58, %v1728_v11  ;;  %v991_v60 = vpop.xlane.xlu0 %990 }
 0x38c   : > { %1302 = vrcp.f32 %v991_v60 }
 0x38d   : > { %1039 = vst [vmem:[%s1742_s28 + $0x68] sm:$0xff] %v1023_v59 }
 0x392   : > { %v1303_v61 = vpop.eup %1302 }
 0x393   : > { %v1024_v62 = vmul.f32 %v1303_v61, %v1732_v16  ;;  %v993_v63 = vpop.xlane.xlu1 %992 }
 0x394   : > { %1304 = vrcp.f32 %v993_v63 }
 0x395   : > { %1040 = vst [vmem:[%s1742_s28 + $0x70] sm:$0xff] %v1024_v62 }
 0x39a   : > { %v1305_v0 = vpop.eup %1304 }
 0x39b   : > { %v1025_v1 = vmul.f32 %v1305_v0, %v1736_v19 }
 0x39d   : > { %1041 = vst [vmem:[%s1742_s28 + $0x78] sm:$0xff] %v1025_v1 }
 0x39e   : > { %1333 = shalt.err (!%p1330_p3)
}
 0x39f   : > { %s1370_s26 = smov 128   ;;  %s1371_s28 = smov 8  }
 0x3a0   : > { %1197 = dma.vmem_to_hbm [thread:$0]  (%p1460_p5), %s1056_s21, 2048, %s1058_s22, %s1043_s13, %s1370_s26, %s1370_s26, %s1371_s28  }
 0x3a1 PF: > { %p1203_p4 = scmp.ge.s32.totalorder %s1368_s12, 2  ;;  %s1072_s17 = sand.u32 1, %s1356_s30  }
 0x3a2   : > { %s1073_s25 = scalar_lea.sflag [#allocation3], %s1072_s17 }
 0x3a3   : > { %p1200_p7 = pnand %p1203_p4, %p1464_p6 }
 0x3a5   : > { %p1201_p8 = pneg %p1200_p7 }
 0x3a7   : > { %1351 = dma.done.wait (%p1201_p8), %s1073_s25, 2048  }
 0x3a8   : > { %1353 = vsyncadd (%p1201_p8), %s1073_s25, 4294965248  ;;  %p19_p9 = scmp.ge.s32.totalorder %s1447_s15, 4   ;;  %s1821_s30 = smov %s1360_s10 }
 0x3a9   : > { %s1822_s10 = smov %s1364_s11  ;;  %s1823_s11 = smov %s1458_s18 }
 0x3aa   : > { %s1824_s12 = smov %s1447_s15  ;;  %21 = sbr.rel (!%p19_p9) target bundleno = 3 (0x3), region = 91 }
 0x3af   :  { %1079 = vsyncpa [#allocation3], 1 }
 0x3b0   :  { %1081 = vsyncpa [#allocation3 + $0x1], 1 }

</bundles_post_ra>
